<compile_context>
chip_gen: v5e
topology: v5e:2x2
jax: 0.10.0
libtpu: 0.0.40
codegen_flags: <defaults>
</compile_context>

<pallas_src>
import functools

import jax
import jax.numpy as jnp
from jax.experimental import pallas as pl
from jax.experimental.pallas import tpu as pltpu

EPS = 1e-5
MOMENTUM = 0.1


# ---------------------------------------------------------------------------
# Tiling heuristics
# ---------------------------------------------------------------------------
def _vmem_limit_bytes():
    """Per-generation scoped-VMEM ceiling."""
    phys = 128 << 20
    try:
        info = pltpu.get_tpu_info()
        phys = getattr(info, "vmem_capacity_bytes", phys) or phys
    except Exception:  # unknown backend / interpret mode
        pass
    if phys <= (64 << 20):
        return 48 << 20      # v7x-class (64 MiB physical per TensorCore)
    return 100 << 20         # v5e / v6e (128 MiB physical)


def _block_col_bytes(n_rows, x_itemsize, out_itemsize):
    # Per-feature-column VMEM cost of one (n_rows, tc) block:
    #   2x double-buffered input + 2x double-buffered output
    #   + ~3 f32 in-kernel temporaries (x cast, centered, product).
    return n_rows * (2 * x_itemsize + 2 * out_itemsize + 3 * 4)


def _choose_tile_c(N, C, x_itemsize, out_itemsize, vmem_limit):
    """Largest lane-aligned C tile that divides C, fits the VMEM budget, and
    leaves >=2 grid steps when possible (v7x shards the grid across 2 TCs)."""
    if C % 128 != 0:
        return C  # block dim == array dim is always legal
    per_col = _block_col_bytes(N, x_itemsize, out_itemsize)
    tc_budget = max(128, int(vmem_limit // max(per_col, 1)) // 128 * 128)
    tc_cap = tc_budget
    if C >= 256:
        tc_cap = min(tc_cap, max(128, (C // 2) // 128 * 128))
    for tc in range(min(tc_cap, C), 127, -128):
        if C % tc == 0:
            return tc
    return 128  # 128 always divides C here


def _choose_tile_n(N, tc, x_itemsize, out_itemsize, vmem_limit):
    """Batch tile for the two-pass (large-N) path."""
    per_row = tc * (2 * x_itemsize + 2 * out_itemsize + 3 * 4)
    tn_budget = max(8, int(vmem_limit // max(per_row, 1)) // 8 * 8)
    hi = min(tn_budget, (N // 8) * 8)
    for tn in range(hi, 7, -8):
        if N % tn == 0:
            return tn
    # TODO(synk): N has no multiple-of-8 divisor under the budget; fall back to
    # the full batch per block (may spill for pathological N).
    return N


# ---------------------------------------------------------------------------
# Kernels
# ---------------------------------------------------------------------------
def _bn_fused_kernel(x_ref, g_ref, b_ref, rm_ref, rv_ref,
                     out_ref, nrm_ref, nrv_ref):
    """Single-pass path: full batch of one C tile resident in VMEM."""
    x = x_ref[...].astype(jnp.float32)                       # (N, TC)
    inv_n = jnp.float32(1.0 / x.shape[0])

    # Two-pass variance within the resident tile (numerically robust; the
    # second sweep is pure VPU work hidden under the DMA pipeline).
    mean = jnp.sum(x, axis=0, keepdims=True) * inv_n         # (1, TC)
    centered = x - mean
    var = jnp.sum(centered * centered, axis=0, keepdims=True) * inv_n

    inv_std = jax.lax.rsqrt(var + EPS)
    scale = g_ref[...].astype(jnp.float32) * inv_std
    out_ref[...] = (centered * scale
                    + b_ref[...].astype(jnp.float32)).astype(out_ref.dtype)

    nrm_ref[...] = (MOMENTUM * mean
                    + (1.0 - MOMENTUM) * rm_ref[...].astype(jnp.float32)
                    ).astype(nrm_ref.dtype)
    nrv_ref[...] = (MOMENTUM * var
                    + (1.0 - MOMENTUM) * rv_ref[...].astype(jnp.float32)
                    ).astype(nrv_ref.dtype)


def _bn_stats_kernel(x_ref, g_ref, b_ref, rm_ref, rv_ref,
                     scale_ref, shift_ref, nrm_ref, nrv_ref,
                     s_acc, sq_acc, *, n_total):
    """Pass 1 of the large-N path: accumulate sum / sumsq over N tiles."""
    n_idx = pl.program_id(1)

    @pl.when(n_idx == 0)
    def _():
        s_acc[...] = jnp.zeros_like(s_acc)
        sq_acc[...] = jnp.zeros_like(sq_acc)

    x = x_ref[...].astype(jnp.float32)                       # (TN, TC)
    s_acc[...] += jnp.sum(x, axis=0, keepdims=True)
    sq_acc[...] += jnp.sum(x * x, axis=0, keepdims=True)

    @pl.when(n_idx == pl.num_programs(1) - 1)
    def _():
        inv_n = jnp.float32(1.0 / n_total)
        mean = s_acc[...] * inv_n
        # One-pass variance here (x is not resident across N tiles); clamp
        # tiny negative values from cancellation.
        var = jnp.maximum(sq_acc[...] * inv_n - mean * mean, 0.0)
        inv_std = jax.lax.rsqrt(var + EPS)
        scale = g_ref[...].astype(jnp.float32) * inv_std
        scale_ref[...] = scale
        shift_ref[...] = b_ref[...].astype(jnp.float32) - mean * scale
        nrm_ref[...] = (MOMENTUM * mean
                        + (1.0 - MOMENTUM) * rm_ref[...].astype(jnp.float32))
        nrv_ref[...] = (MOMENTUM * var
                        + (1.0 - MOMENTUM) * rv_ref[...].astype(jnp.float32))


def _bn_apply_kernel(x_ref, scale_ref, shift_ref, out_ref):
    """Pass 2 of the large-N path: fused scale/shift FMA."""
    x = x_ref[...].astype(jnp.float32)
    out_ref[...] = (x * scale_ref[...] + shift_ref[...]).astype(out_ref.dtype)


# ---------------------------------------------------------------------------
# Wrapper
# ---------------------------------------------------------------------------
def my_batchnorm(x, gamma, beta, running_mean, running_var, *,
                 force_two_pass=False):
    """Training-mode forward of MyBatchNorm.

    x: (N, C); gamma, beta, running_mean, running_var: (C,)
    Returns (out (N, C), new_running_mean (C,), new_running_var (C,)).
    """
    # TODO(synk): only training-mode forward is implemented (matches the
    # reference usage); the eval branch (use running stats) would just be the
    # apply kernel with scale/shift built from the running stats.
    N, C = x.shape
    vmem_limit = _vmem_limit_bytes()
    x_isz = jnp.dtype(x.dtype).itemsize
    o_isz = x_isz

    gamma2 = gamma.reshape(1, C).astype(jnp.float32)
    beta2 = beta.reshape(1, C).astype(jnp.float32)
    rm2 = running_mean.reshape(1, C).astype(jnp.float32)
    rv2 = running_var.reshape(1, C).astype(jnp.float32)

    min_tc = 128 if C % 128 == 0 else C
    single_pass_ok = _block_col_bytes(N, x_isz, o_isz) * min_tc <= vmem_limit

    if single_pass_ok and not force_two_pass:
        # -------- Path A: one fused kernel, grid over C tiles only --------
        tc = _choose_tile_c(N, C, x_isz, o_isz, vmem_limit)
        x_spec = pl.BlockSpec((N, tc), lambda j: (0, j))
        row_spec = pl.BlockSpec((1, tc), lambda j: (0, j))

        out, new_rm, new_rv = pl.pallas_call(
            _bn_fused_kernel,
            out_shape=(
                jax.ShapeDtypeStruct((N, C), x.dtype),
                jax.ShapeDtypeStruct((1, C), jnp.float32),
                jax.ShapeDtypeStruct((1, C), jnp.float32),
            ),
            grid_spec=pltpu.PrefetchScalarGridSpec(
                num_scalar_prefetch=0,
                grid=(C // tc,),
                in_specs=[x_spec, row_spec, row_spec, row_spec, row_spec],
                out_specs=[x_spec, row_spec, row_spec],
            ),
            compiler_params=pltpu.CompilerParams(
                dimension_semantics=("parallel",),
                vmem_limit_bytes=vmem_limit,
            ),
        )(x, gamma2, beta2, rm2, rv2)
        return out, new_rm.reshape(C), new_rv.reshape(C)

    # -------- Path B: large N — two-pass (stats, then apply) --------
    tc = 128 if C % 128 == 0 else C
    tn = _choose_tile_n(N, tc, x_isz, o_isz, vmem_limit)
    grid2 = (C // tc, N // tn)

    x_spec2 = pl.BlockSpec((tn, tc), lambda j, n: (n, j))
    row_spec2 = pl.BlockSpec((1, tc), lambda j, n: (0, j))

    scale, shift, new_rm, new_rv = pl.pallas_call(
        functools.partial(_bn_stats_kernel, n_total=N),
        out_shape=tuple(jax.ShapeDtypeStruct((1, C), jnp.float32)
                        for _ in range(4)),
        grid_spec=pltpu.PrefetchScalarGridSpec(
            num_scalar_prefetch=0,
            grid=grid2,
            in_specs=[x_spec2, row_spec2, row_spec2, row_spec2, row_spec2],
            out_specs=[row_spec2, row_spec2, row_spec2, row_spec2],
            scratch_shapes=[pltpu.VMEM((1, tc), jnp.float32),
                            pltpu.VMEM((1, tc), jnp.float32)],
        ),
        compiler_params=pltpu.CompilerParams(
            dimension_semantics=("parallel", "arbitrary"),
            vmem_limit_bytes=vmem_limit,
        ),
    )(x, gamma2, beta2, rm2, rv2)

    out = pl.pallas_call(
        _bn_apply_kernel,
        out_shape=jax.ShapeDtypeStruct((N, C), x.dtype),
        grid_spec=pltpu.PrefetchScalarGridSpec(
            num_scalar_prefetch=0,
            grid=grid2,
            in_specs=[x_spec2, row_spec2, row_spec2],
            out_specs=x_spec2,
        ),
        compiler_params=pltpu.CompilerParams(
            dimension_semantics=("parallel", "parallel"),
            vmem_limit_bytes=vmem_limit,
        ),
    )(x, scale, shift)

    return out, new_rm.reshape(C), new_rv.reshape(C)


# ---------------------------------------------------------------------------
# Demo / correctness check
# ---------------------------------------------------------------------------
if __name__ == "__main__":
    key = jax.random.PRNGKey(0)
    N, C = 8, 256  # small batch, lane-aligned feature dim -> grid (2,)

    x = jax.random.normal(key, (N, C), dtype=jnp.float32)

    # Deterministic parameter init matching MyBatchNorm.__init__
    gamma = jnp.ones((C,), dtype=jnp.float32)           # self.gamma
    beta = jnp.zeros((C,), dtype=jnp.float32)           # self.bata
    running_mean = jnp.zeros((C,), dtype=jnp.float32)   # buffer
    running_var = jnp.ones((C,), dtype=jnp.float32)     # buffer

    # Pure-JAX reference of the PyTorch training-mode forward.
    mean_ref = jnp.mean(x, axis=0)
    var_ref = jnp.mean((x - mean_ref) ** 2, axis=0)     # unbiased=False
    out_ref = gamma * (x - mean_ref) / jnp.sqrt(var_ref + EPS) + beta
    rm_ref = MOMENTUM * mean_ref + (1 - MOMENTUM) * running_mean
    rv_ref = MOMENTUM * var_ref + (1 - MOMENTUM) * running_var

    # Exercise both the fused single-pass path and the large-N two-pass path.
    for force in (False, True):
        out, new_rm, new_rv = my_batchnorm(
            x, gamma, beta, running_mean, running_var, force_two_pass=force)
        jax.block_until_ready((out, new_rm, new_rv))
        assert jnp.allclose(out, out_ref, atol=1e-4, rtol=1e-4)
        assert jnp.allclose(new_rm, rm_ref, atol=1e-5)
        assert jnp.allclose(new_rv, rv_ref, atol=1e-5)

    print("KERNEL_OK")
</pallas_src>

<mosaic_0001>
module attributes {stable_mosaic.version = 11 : i64} {
  func.func @_bn_fused_kernel(%arg0: i32, %arg1: memref<8x128xf32, #tpu.memory_space<vmem>>, %arg2: memref<1x128xf32, #tpu.memory_space<vmem>>, %arg3: memref<1x128xf32, #tpu.memory_space<vmem>>, %arg4: memref<1x128xf32, #tpu.memory_space<vmem>>, %arg5: memref<1x128xf32, #tpu.memory_space<vmem>>, %arg6: memref<8x128xf32, #tpu.memory_space<vmem>>, %arg7: memref<1x128xf32, #tpu.memory_space<vmem>>, %arg8: memref<1x128xf32, #tpu.memory_space<vmem>>) attributes {dimension_semantics = [#tpu.dimension_semantics<parallel>], iteration_bounds = array<i64: 2>, scalar_prefetch = 0 : i64, scratch_operands = 0 : i64, tpu.core_type = #tpu.core_type<tc>, window_params = [{transform_indices = @transform_0, window_bounds = array<i64: 8, 128>}, {transform_indices = @transform_1, window_bounds = array<i64: 1, 128>}, {transform_indices = @transform_2, window_bounds = array<i64: 1, 128>}, {transform_indices = @transform_3, window_bounds = array<i64: 1, 128>}, {transform_indices = @transform_4, window_bounds = array<i64: 1, 128>}, {transform_indices = @transform_5, window_bounds = array<i64: 8, 128>}, {transform_indices = @transform_6, window_bounds = array<i64: 1, 128>}, {transform_indices = @transform_7, window_bounds = array<i64: 1, 128>}]} {
    %c0 = arith.constant 0 : index
    %c0_0 = arith.constant 0 : index
    %0 = vector.load %arg1[%c0, %c0_0] : memref<8x128xf32, #tpu.memory_space<vmem>>, vector<8x128xf32>
    %cst = arith.constant dense<0.000000e+00> : vector<128xf32>
    %1 = vector.multi_reduction <add>, %0, %cst [0] : vector<8x128xf32> to vector<128xf32>
    %2 = vector.shape_cast %1 : vector<128xf32> to vector<1x128xf32>
    %cst_1 = arith.constant 1.250000e-01 : f32
    %3 = vector.broadcast %cst_1 : f32 to vector<1x128xf32>
    %4 = arith.mulf %2, %3 : vector<1x128xf32>
    %5 = vector.broadcast %4 : vector<1x128xf32> to vector<8x128xf32>
    %6 = arith.subf %0, %5 : vector<8x128xf32>
    %7 = arith.mulf %6, %6 : vector<8x128xf32>
    %cst_2 = arith.constant dense<0.000000e+00> : vector<128xf32>
    %8 = vector.multi_reduction <add>, %7, %cst_2 [0] : vector<8x128xf32> to vector<128xf32>
    %9 = vector.shape_cast %8 : vector<128xf32> to vector<1x128xf32>
    %cst_3 = arith.constant 1.250000e-01 : f32
    %10 = vector.broadcast %cst_3 : f32 to vector<1x128xf32>
    %11 = arith.mulf %9, %10 : vector<1x128xf32>
    %cst_4 = arith.constant 9.99999974E-6 : f32
    %12 = vector.broadcast %cst_4 : f32 to vector<1x128xf32>
    %13 = arith.addf %11, %12 : vector<1x128xf32>
    %14 = math.rsqrt %13 : vector<1x128xf32>
    %c0_5 = arith.constant 0 : index
    %c0_6 = arith.constant 0 : index
    %15 = vector.load %arg2[%c0_5, %c0_6] : memref<1x128xf32, #tpu.memory_space<vmem>>, vector<1x128xf32>
    %16 = arith.mulf %15, %14 : vector<1x128xf32>
    %17 = vector.broadcast %16 : vector<1x128xf32> to vector<8x128xf32>
    %18 = arith.mulf %6, %17 : vector<8x128xf32>
    %c0_7 = arith.constant 0 : index
    %c0_8 = arith.constant 0 : index
    %19 = vector.load %arg3[%c0_7, %c0_8] : memref<1x128xf32, #tpu.memory_space<vmem>>, vector<1x128xf32>
    %20 = vector.broadcast %19 : vector<1x128xf32> to vector<8x128xf32>
    %21 = arith.addf %18, %20 : vector<8x128xf32>
    %c0_9 = arith.constant 0 : index
    %c0_10 = arith.constant 0 : index
    %22 = vector.load %arg6[%c0_9, %c0_10] : memref<8x128xf32, #tpu.memory_space<vmem>>, vector<8x128xf32>
    tpu.vector_store %arg6[%c0_9, %c0_10], %21 {strides = array<i32>} : memref<8x128xf32, #tpu.memory_space<vmem>>, vector<8x128xf32>,
    %cst_11 = arith.constant 1.000000e-01 : f32
    %23 = vector.broadcast %cst_11 : f32 to vector<1x128xf32>
    %24 = arith.mulf %23, %4 : vector<1x128xf32>
    %c0_12 = arith.constant 0 : index
    %c0_13 = arith.constant 0 : index
    %25 = vector.load %arg4[%c0_12, %c0_13] : memref<1x128xf32, #tpu.memory_space<vmem>>, vector<1x128xf32>
    %cst_14 = arith.constant 0.899999976 : f32
    %26 = vector.broadcast %cst_14 : f32 to vector<1x128xf32>
    %27 = arith.mulf %26, %25 : vector<1x128xf32>
    %28 = arith.addf %24, %27 : vector<1x128xf32>
    %c0_15 = arith.constant 0 : index
    %c0_16 = arith.constant 0 : index
    %29 = vector.load %arg7[%c0_15, %c0_16] : memref<1x128xf32, #tpu.memory_space<vmem>>, vector<1x128xf32>
    tpu.vector_store %arg7[%c0_15, %c0_16], %28 {strides = array<i32>} : memref<1x128xf32, #tpu.memory_space<vmem>>, vector<1x128xf32>,
    %cst_17 = arith.constant 1.000000e-01 : f32
    %30 = vector.broadcast %cst_17 : f32 to vector<1x128xf32>
    %31 = arith.mulf %30, %11 : vector<1x128xf32>
    %c0_18 = arith.constant 0 : index
    %c0_19 = arith.constant 0 : index
    %32 = vector.load %arg5[%c0_18, %c0_19] : memref<1x128xf32, #tpu.memory_space<vmem>>, vector<1x128xf32>
    %cst_20 = arith.constant 0.899999976 : f32
    %33 = vector.broadcast %cst_20 : f32 to vector<1x128xf32>
    %34 = arith.mulf %33, %32 : vector<1x128xf32>
    %35 = arith.addf %31, %34 : vector<1x128xf32>
    %c0_21 = arith.constant 0 : index
    %c0_22 = arith.constant 0 : index
    %36 = vector.load %arg8[%c0_21, %c0_22] : memref<1x128xf32, #tpu.memory_space<vmem>>, vector<1x128xf32>
    tpu.vector_store %arg8[%c0_21, %c0_22], %35 {strides = array<i32>} : memref<1x128xf32, #tpu.memory_space<vmem>>, vector<1x128xf32>,
    return
  }
  func.func @transform_0(%arg0: i32) -> (i32, i32) {
    %c0_i32 = arith.constant 0 : i32
    %c0_i32_0 = arith.constant 0 : i32
    return %c0_i32, %arg0 : i32, i32
  }
  func.func @transform_1(%arg0: i32) -> (i32, i32) {
    %c0_i32 = arith.constant 0 : i32
    %c0_i32_0 = arith.constant 0 : i32
    return %c0_i32, %arg0 : i32, i32
  }
  func.func @transform_2(%arg0: i32) -> (i32, i32) {
    %c0_i32 = arith.constant 0 : i32
    %c0_i32_0 = arith.constant 0 : i32
    return %c0_i32, %arg0 : i32, i32
  }
  func.func @transform_3(%arg0: i32) -> (i32, i32) {
    %c0_i32 = arith.constant 0 : i32
    %c0_i32_0 = arith.constant 0 : i32
    return %c0_i32, %arg0 : i32, i32
  }
  func.func @transform_4(%arg0: i32) -> (i32, i32) {
    %c0_i32 = arith.constant 0 : i32
    %c0_i32_0 = arith.constant 0 : i32
    return %c0_i32, %arg0 : i32, i32
  }
  func.func @transform_5(%arg0: i32) -> (i32, i32) {
    %c0_i32 = arith.constant 0 : i32
    %c0_i32_0 = arith.constant 0 : i32
    return %c0_i32, %arg0 : i32, i32
  }
  func.func @transform_6(%arg0: i32) -> (i32, i32) {
    %c0_i32 = arith.constant 0 : i32
    %c0_i32_0 = arith.constant 0 : i32
    return %c0_i32, %arg0 : i32, i32
  }
  func.func @transform_7(%arg0: i32) -> (i32, i32) {
    %c0_i32 = arith.constant 0 : i32
    %c0_i32_0 = arith.constant 0 : i32
    return %c0_i32, %arg0 : i32, i32
  }
}

</mosaic_0001>

<bundles_post_ra>
// kernel: tpu_custom_call.1
= control target key start
LH: loop header
LB: loop body
LE: loop exit
PB: predicated region body
PF: predicated region fallthrough
CT: control target
= control target key end

     0   :  { %s1357_s0 = inlined_call_operand.hbm [shape: f32[8,256], index: 0, kind: input, shape index: {}]   ;;  %s1358_s1 = inlined_call_operand.hbm [shape: f32[1,256], index: 1, kind: input, shape index: {}]   ;;  %s1359_s2 = inlined_call_operand.hbm [shape: f32[1,256], index: 2, kind: input, shape index: {}]   ;;  %s1360_s3 = inlined_call_operand.vmem [shape: f32[1,256], index: 3, kind: input, shape index: {}]   ;;  %s1361_s4 = inlined_call_operand.hbm [shape: f32[1,256], index: 4, kind: input, shape index: {}]   ;;  %s1362_s5 = inlined_call_operand.hbm [shape: f32[8,256], index: 5, kind: output, shape index: {0}]   ;;  %s1363_s6 = inlined_call_operand.hbm [shape: f32[1,256], index: 6, kind: output, shape index: {1}]   ;;  %s1364_s7 = inlined_call_operand.hbm [shape: f32[1,256], index: 7, kind: output, shape index: {2}]  }
   0x1   :  { %1370 = sst [smem:[#allocation23_spill]] %s1358_s1 }
   0x2   :  { %13 = vsyncpa [#allocation3], 0 }
   0x3   :  { %15 = vsyncpa [#allocation3 + $0x1], 0 }
   0x4   :  { %16 = vsyncpa [#allocation6], 0 }
   0x5   :  { %18 = vsyncpa [#allocation6 + $0x1], 0 }
   0x6   :  { %19 = vsyncpa [#allocation9], 0 }
   0x7   :  { %21 = vsyncpa [#allocation9 + $0x1], 0 }
   0x8   :  { %22 = vsyncpa [#allocation4], 0 }
   0x9   :  { %24 = vsyncpa [#allocation4 + $0x1], 0 }
   0xa   :  { %25 = vsyncpa [#allocation12], 0 }
   0xb   :  { %27 = vsyncpa [#allocation12 + $0x1], 0  ;;  %s1096_s24 = smov 0   ;;  %s1098_s25 = smov 0  }
   0xc   :  { %s1100_s26 = smov 0   ;;  %s1102_s27 = smov 0  }
   0xd LB: > { %1371 = sst [smem:[#allocation19_spill]] %s1050_s26  ;;  %s1117_s28 = sadd.s32 4294967295, %s1054_s27   ;;  %s1054_s27 = sphi %s1102_s27, %s1383_s27   ;;  %s1050_s26 = sphi %s1100_s26, %s1385_s26   ;;  %s1046_s25 = sphi %s1098_s25, %s1387_s25   ;;  %s1042_s24 = sphi %s1096_s24, %s1386_s24  }
   0xe   : > { %s1365_s29 = sadd.s32 4294967294, %s1054_s27   ;;  %s1121_s30 = sadd.s32 1, %s1054_s27  }
   0xf   : > { %1372 = sst [smem:[#allocation20_spill]] %s1121_s30  ;;  %s40_s8 = sadd.s32 1, %s1050_s26 }
  0x10   : > { %s37_s9 = ssub.s32 %s1054_s27, %s1121_s30  ;;  %p47_p0 = scmp.ne.s32.totalorder %s1050_s26, %s1046_s25 }
  0x11   : > { %p38_p1 = scmp.eq.s32.totalorder %s37_s9, 0  ;;  %p48_p2 = scmp.eq.s32.totalorder %s1054_s27, 0 }
  0x12   : > { %p53_p3 = scmp.ne.s32.totalorder %s1046_s25, %s1042_s24  ;;  %p54_p4 = scmp.eq.s32.totalorder %s1117_s28, 0 }
  0x13   : > { %s1133_s10 = scalar_select %p38_p1, %s1050_s26, %s40_s8  }
  0x14   : > { %p49_p5 = por %p48_p2, %p47_p0  ;;  %p1135_p6 = por %p54_p4, %p53_p3 }
  0x15   : > { %1373 = sst [smem:[#allocation21_spill]] %s1133_s10  ;;  %p181_p7 = scmp.eq.s32.totalorder %s1117_s28, 1 }
  0x16   : > { %p187_p8 = scmp.eq.s32.totalorder %s1365_s29, 1  ;;  %p716_p9 = scmp.ge.s32.totalorder %s1054_s27, 2 }
  0x17   : > { %p763_p10 = scmp.lt.s32.totalorder %s1054_s27, 2  ;;  %p1144_p11 = por %p181_p7, %p47_p0 }
  0x18   : > { %p1148_p12 = por %p187_p8, %p53_p3  ;;  %s1153_s14 = sand.u32 1, %s1050_s26  }
  0x19   : > { %p1155_p13 = pnand %p763_p10, %p49_p5  ;;  %s278_s16 = sand.u32 1, %s1054_s27  }
  0x1a   : > { %s1376_s13 = scalar_select %p1148_p12, 1, 0 }
  0x1b   : > { %s1379_s1 = sld [smem:[#allocation23_spill]]  ;;  %s281_s20 = scalar_lea.vmem [#allocation5], %s1153_s14 }
  0x1c   : > { %1377 = sst [smem:[#allocation22_spill]] %s1376_s13  ;;  %s288_s21 = sshll.u32 %s281_s20, 4  ;;  %s289_s21 = int_to_ptr.vmem [resolvable:$true] %s288_s21 }
  0x1d   : > { %p719_p0 = scmp.ge.s32.totalorder %s1054_s27, 1  ;;  %s1166_s23 = scalar_lea.sflag [#allocation6], %s278_s16 }
  0x1e   : > { %p804_p2 = pneg %p1155_p13 }
  0x21   : > { %s284_s19 = scalar_lea.hbm %s1379_s1, %s1054_s27  ;;  %s807_s20 = scalar_lea.hbm %s1379_s1, 2 }
  0x22   : > { %s286_s22 = sshll.u32 %s284_s19, 4  ;;  %s287_s22 = int_to_ptr.hbm [resolvable:$true] %s286_s22 }
  0x23   : > { %s800_s8 = sshra.s32 %s287_s22, 4  ;;  %s801_s8 = int_to_ptr.hbm [resolvable:$true] %s800_s8 }
  0x24   : > { %s802_s9 = scalar_lea.hbm %s801_s8, 1  ;;  %p808_p5 = scmp.lt.s32.totalorder %s801_s8, %s1379_s1 }
  0x25   : > { %p803_p1 = scmp.ne.s32.totalorder %s801_s8, %s802_s9  ;;  %p809_p7 = scmp.lt.s32.totalorder %s807_s20, %s802_s9 }
  0x27   : > { %p805_p3 = pnand %p804_p2, %p803_p1  ;;  %p810_p8 = por %p809_p7, %p808_p5 }
  0x29   : > { %p806_p4 = pneg %p805_p3 }
  0x2b   : > { %p811_p10 = pnand %p810_p8, %p806_p4 }
  0x2d   : > { %814 = shalt.err (!%p811_p10)
}
  0x2e   : > { %746 = dma.hbm_to_vmem [thread:$0]  (!%p1155_p13), %s287_s22, 16, %s289_s21, %s1166_s23  }
  0x2f   : > { %p333_p1 = scmp.lt.s32.totalorder %s1054_s27, 3  ;;  %s717_s16 = sshll.u32 %s1153_s14, 3 }
  0x30   : > { %s718_s17 = sshll.u32 %s1054_s27, 3  ;;  %s263_s20 = scalar_lea.vmem [#allocation2], %s717_s16 }
  0x31   : > { %p1187_p3 = pnand %p719_p0, %p333_p1  ;;  %s267_s18 = scalar_lea.hbm %s1357_s0, %s718_s17 }
  0x32   : > { %s271_s19 = sshll.u32 %s263_s20, 4  ;;  %s269_s1 = sshll.u32 %s267_s18, 4  ;;  %s272_s19 = int_to_ptr.vmem [resolvable:$true] %s271_s19  ;;  %s270_s1 = int_to_ptr.hbm [resolvable:$true] %s269_s1 }
  0x33   : > { %s260_s10 = scalar_lea.sflag [#allocation3], %s1153_s14  ;;  %s830_s21 = sshra.s32 %s270_s1, 4  ;;  %s831_s21 = int_to_ptr.hbm [resolvable:$true] %s830_s21 }
  0x34   : > { %s832_s22 = scalar_lea.hbm %s831_s21, 8  ;;  %s837_s13 = scalar_lea.hbm %s1357_s0, 16 }
  0x35   : > { %p833_p4 = scmp.ne.s32.totalorder %s831_s21, %s832_s22  ;;  %p838_p7 = scmp.lt.s32.totalorder %s831_s21, %s1357_s0 }
  0x36   : > { %p839_p8 = scmp.lt.s32.totalorder %s837_s13, %s832_s22 }
  0x37   : > { %p835_p0 = pnand %p833_p4, %p804_p2 }
  0x38   : > { %p840_p10 = por %p839_p8, %p838_p7 }
  0x39   : > { %p836_p5 = pneg %p835_p0 }
  0x3b   : > { %p841_p1 = pnand %p840_p10, %p836_p5 }
  0x3d   : > { %844 = shalt.err (!%p841_p1)
}
  0x3e   : > { %743 = dma.hbm_to_vmem [thread:$0]  (!%p1155_p13), %s270_s1, 128, %s272_s19, %s260_s10  }
  0x3f   : > { %s301_s18 = scalar_lea.hbm %s1359_s2, %s1054_s27  ;;  %s298_s26 = scalar_lea.vmem [#allocation7], %s1153_s14 }
  0x40   : > { %s305_s30 = sshll.u32 %s298_s26, 4  ;;  %s303_s20 = sshll.u32 %s301_s18, 4  ;;  %s306_s30 = int_to_ptr.vmem [resolvable:$true] %s305_s30  ;;  %s304_s20 = int_to_ptr.hbm [resolvable:$true] %s303_s20 }
  0x41   : > { %s860_s21 = sshra.s32 %s304_s20, 4  ;;  %s867_s1 = scalar_lea.hbm %s1359_s2, 2  ;;  %s861_s21 = int_to_ptr.hbm [resolvable:$true] %s860_s21 }
  0x42   : > { %s862_s13 = scalar_lea.hbm %s861_s21, 1  ;;  %p868_p7 = scmp.lt.s32.totalorder %s861_s21, %s1359_s2 }
  0x43   : > { %p863_p4 = scmp.ne.s32.totalorder %s861_s21, %s862_s13  ;;  %p869_p8 = scmp.lt.s32.totalorder %s867_s1, %s862_s13 }
  0x45   : > { %p865_p0 = pnand %p863_p4, %p804_p2  ;;  %p870_p10 = por %p869_p8, %p868_p7 }
  0x47   : > { %p866_p5 = pneg %p865_p0 }
  0x49   : > { %p871_p1 = pnand %p870_p10, %p866_p5 }
  0x4b   : > { %874 = shalt.err (!%p871_p1)
}
  0x4c   : > { %749 = dma.hbm_to_vmem [thread:$0]  (!%p1155_p13), %s304_s20, 16, %s306_s30, %s1166_s23  }
  0x4d   : > { %s324_s9 = scalar_lea.hbm %s1361_s4, %s1054_s27  ;;  %s321_s26 = scalar_lea.vmem [#allocation8], %s1153_s14 }
  0x4e   : > { %s326_s18 = sshll.u32 %s324_s9, 4  ;;  %s328_s22 = sshll.u32 %s321_s26, 4  ;;  %s327_s18 = int_to_ptr.hbm [resolvable:$true] %s326_s18  ;;  %s329_s22 = int_to_ptr.vmem [resolvable:$true] %s328_s22 }
  0x4f   : > { %s319_s21 = scalar_lea.sflag [#allocation9], %s1153_s14  ;;  %s890_s13 = sshra.s32 %s327_s18, 4  ;;  %s891_s13 = int_to_ptr.hbm [resolvable:$true] %s890_s13 }
  0x50   : > { %s892_s8 = scalar_lea.hbm %s891_s13, 1  ;;  %s897_s30 = scalar_lea.hbm %s1361_s4, 2 }
  0x51   : > { %p893_p4 = scmp.ne.s32.totalorder %s891_s13, %s892_s8  ;;  %p898_p7 = scmp.lt.s32.totalorder %s891_s13, %s1361_s4 }
  0x52   : > { %p899_p8 = scmp.lt.s32.totalorder %s897_s30, %s892_s8 }
  0x53   : > { %p895_p0 = pnand %p893_p4, %p804_p2 }
  0x54   : > { %p900_p10 = por %p899_p8, %p898_p7 }
  0x55   : > { %p896_p5 = pneg %p895_p0 }
  0x57   : > { %p901_p1 = pnand %p900_p10, %p896_p5 }
  0x59   : > { %904 = shalt.err (!%p901_p1)
}
  0x5a   : > { %752 = dma.hbm_to_vmem [thread:$0]  (!%p1155_p13), %s327_s18, 16, %s329_s22, %s319_s21  }
  0x5b   : > { %337 = sbr.rel (%p1187_p3) target bundleno = 167 (0xa7), region = 40  ;;  %s1243_s14 = sand.u32 (!%p1187_p3), 1, %s1046_s25  }
  0x5c   : > { %s720_s19 = sshll.u32 (!%p1187_p3), %s1243_s14, 3  ;;  %s340_s17 = scalar_lea.sflag (!%p1187_p3), [#allocation3], %s1243_s14 }
  0x5d   : > { %s343_s16 = scalar_lea.vmem (!%p1187_p3), [#allocation2], %s720_s19 }
  0x60   : > { %1021 = dma.done.wait (%p1135_p6), %s340_s17, 128  }
  0x61   : > { %1023 = vsyncadd (%p1135_p6), %s340_s17, 4294967168  ;;  %s349_s15 = sand.u32 1, %s1117_s28   ;;  %s352_s9 = scalar_lea.vmem [#allocation5], %s1243_s14 }
  0x62   : > { %s350_s29 = scalar_lea.sflag [#allocation6], %s349_s15 }
  0x63   : > { %1025 = dma.done.wait (%p1135_p6), %s350_s29, 32  }
  0x64   : > { %1027 = vsyncadd (%p1135_p6), %s350_s29, 4294967264  ;;  %s361_s18 = scalar_lea.vmem [#allocation7], %s1243_s14  ;;  %s368_s26 = scalar_lea.sflag [#allocation9], %s1243_s14 }
  0x65   : > { %s370_s22 = scalar_lea.vmem [#allocation8], %s1243_s14 }
  0x66   : > { %1029 = dma.done.wait (%p1135_p6), %s368_s26, 16  }
  0x67   : > { %1031 = vsyncadd (%p1135_p6), %s368_s26, 4294967280  ;;  %p425_p13 = scmp.lt.s32.totalorder %s1117_s28, 1  ;;  %v428_v0 = vld [vmem:[%s343_s16] sm:$0xff]  ;;  %s510_s30 = scalar_lea.hbm %s1363_s6, %s1117_s28 }
  0x68   : > { %v429_v1 = vrot.slane %v428_v0, 4  ;;  %s418_s20 = scalar_lea.vmem [#allocation11], %s1243_s14  ;;  %s514_s17 = sshll.u32 %s510_s30, 4  ;;  %s515_s17 = int_to_ptr.hbm [resolvable:$true] %s514_s17 }
  0x69   : > { %s426_s21 = scalar_select %p425_p13, %s1117_s28, 1 }
  0x6a   : > { %v430_v2 = vadd.f32 %v429_v1, %v428_v0  ;;  %s512_s10 = sshll.u32 %s418_s20, 4  ;;  %s1284_s16 = scalar_lea.sflag [#allocation12], %s349_s15  ;;  %s513_s10 = int_to_ptr.vmem [resolvable:$true] %s512_s10 }
  0x6b   : > { %s427_s1 = scalar_lea.vmem %s1360_s3, %s426_s21  ;;  %s934_s29 = sshra.s32 %s515_s17, 4  ;;  %s935_s29 = int_to_ptr.hbm [resolvable:$true] %s934_s29 }
  0x6c   : > { %v431_v3 = vrot.slane %v430_v2, 2  ;;  %v469_v6 = vld [vmem:[%s427_s1] sm:$0x1]  ;;  %s936_s26 = scalar_lea.hbm %s935_s29, 1  ;;  %s940_s8 = scalar_lea.hbm %s1363_s6, 2 }
  0x6d   : > { %v470_v9 = vmul.f32 0.9, %v469_v6  ;;  %p937_p6 = scmp.ne.s32.totalorder %s935_s29, %s936_s26  ;;  %p941_p4 = scmp.lt.s32.totalorder %s935_s29, %s1363_s6 }
  0x6e   : > { %v432_v4 = vadd.f32 %v431_v3, %v430_v2  ;;  %p942_p0 = scmp.lt.s32.totalorder %s940_s8, %s936_s26 }
  0x6f   : > { %p938_p2 = pnand %p937_p6, %p1144_p11 }
  0x70   : > { %v433_v5 = vrot.slane %v432_v4, 1  ;;  %p943_p5 = por %p942_p0, %p941_p4 }
  0x71   : > { %p939_p3 = pneg %p938_p2 }
  0x72   : > { %v434_v7 = vadd.f32 %v433_v5, %v432_v4 }
  0x73   : > { %p944_p7 = pnand %p943_p5, %p939_p3 }
  0x74   : > { %v435_v8 = vmul.f32 0.125, %v434_v7 }
  0x76   : > { %v468_v10 = vmul.f32 0.1, %v435_v8  ;;  %v1278_v11 = vsub.f32 %v428_v0, %v435_v8 }
  0x78   : > { %v471_v12 = vadd.f32 %v470_v9, %v468_v10  ;;  %v437_v13 = vmul.f32 %v1278_v11, %v1278_v11 }
  0x7a   : > { %472 = vst [vmem:[%s418_s20] sm:$0x1] %v471_v12  ;;  %v438_v14 = vrot.slane %v437_v13, 4 }
  0x7b   : > { %947 = shalt.err (!%p944_p7)
}
  0x7c   : > { %735 = dma.vmem_to_hbm [thread:$0]  (%p1144_p11), %s513_s10, 16, %s515_s17, %s1284_s16   ;;  %v439_v15 = vadd.f32 %v438_v14, %v437_v13  ;;  %v474_v19 = vld [vmem:[%s370_s22] sm:$0x1] }
  0x7d   : > { %s523_s30 = scalar_lea.hbm %s1364_s7, %s1117_s28  ;;  %v475_v22 = vmul.f32 0.9, %v474_v19  ;;  %s424_s20 = scalar_lea.vmem [#allocation13], %s1243_s14 }
  0x7e   : > { %v440_v16 = vrot.slane %v439_v15, 2  ;;  %s525_s29 = sshll.u32 %s424_s20, 4  ;;  %s527_s26 = sshll.u32 %s523_s30, 4  ;;  %s526_s29 = int_to_ptr.vmem [resolvable:$true] %s525_s29  ;;  %s528_s26 = int_to_ptr.hbm [resolvable:$true] %s527_s26 }
  0x7f   : > { %s962_s10 = sshra.s32 %s528_s26, 4  ;;  %s968_s13 = scalar_lea.hbm %s1364_s7, 2  ;;  %s963_s10 = int_to_ptr.hbm [resolvable:$true] %s962_s10 }
  0x80   : > { %v441_v17 = vadd.f32 %v440_v16, %v439_v15  ;;  %s964_s22 = scalar_lea.hbm %s963_s10, 1  ;;  %p969_p13 = scmp.lt.s32.totalorder %s963_s10, %s1364_s7 }
  0x81   : > { %p965_p8 = scmp.ne.s32.totalorder %s963_s10, %s964_s22  ;;  %p970_p6 = scmp.lt.s32.totalorder %s968_s13, %s964_s22 }
  0x82   : > { %v442_v18 = vrot.slane %v441_v17, 1 }
  0x83   : > { %p966_p10 = pnand %p965_p8, %p1144_p11  ;;  %p971_p2 = por %p970_p6, %p969_p13 }
  0x84   : > { %v443_v20 = vadd.f32 %v442_v18, %v441_v17 }
  0x85   : > { %p967_p1 = pneg %p966_p10 }
  0x86   : > { %v444_v21 = vmul.f32 0.125, %v443_v20 }
  0x87   : > { %p972_p3 = pnand %p971_p2, %p967_p1 }
  0x88   : > { %v445_v23 = vadd.f32 1e-05, %v444_v21  ;;  %v473_v24 = vmul.f32 0.1, %v444_v21 }
  0x8a   : > { %798 = vrsqrt.f32 %v445_v23  ;;  %v476_v25 = vadd.f32 %v475_v22, %v473_v24 }
  0x8c   : > { %477 = vst [vmem:[%s424_s20] sm:$0x1] %v476_v25 }
  0x8d   : > { %975 = shalt.err (!%p972_p3)
}
  0x8e   : > { %736 = dma.vmem_to_hbm [thread:$0]  (%p1144_p11), %s526_s29, 16, %s528_s26, %s1284_s16   ;;  %vm452_vm0 = vweird.f32 %v445_v23  ;;  %v456_v32 = vld [vmem:[%s352_s9] sm:$0x1] }
  0x8f   : > { %s723_s11 = sshll.u32 %s1117_s28, 3  ;;  %v797_v36 = vld [vmem:[%s361_s18] ss:$0 sm:$0xff]  ;;  %s412_s30 = scalar_lea.vmem [#allocation10], %s720_s19 }
  0x90   : > { %v799_v26 = vpop.eup %798  ;;  %s497_s16 = scalar_lea.hbm %s1362_s5, %s723_s11  ;;  %s499_s20 = sshll.u32 %s412_s30, 4  ;;  %s500_s20 = int_to_ptr.vmem [resolvable:$true] %s499_s20 }
  0x91   : > { %v447_v27 = vmul.f32 %v799_v26, %v445_v23  ;;  %vm453_vm1 = vweird.f32 %v799_v26  ;;  %s501_s29 = sshll.u32 %s497_s16, 4  ;;  %s479_s28 = scalar_lea.sflag [#allocation4], %s1243_s14  ;;  %s502_s29 = int_to_ptr.hbm [resolvable:$true] %s501_s29 }
  0x92   : > { %vm454_vm2 = vmor %vm452_vm0, %vm453_vm1  ;;  %s990_s9 = sshra.s32 %s502_s29, 4  ;;  %s996_s19 = scalar_lea.hbm %s1362_s5, 16  ;;  %s991_s9 = int_to_ptr.hbm [resolvable:$true] %s990_s9 }
  0x93   : > { %v448_v28 = vmul.f32 %v799_v26, %v447_v27  ;;  %s992_s26 = scalar_lea.hbm %s991_s9, 8  ;;  %p997_p7 = scmp.lt.s32.totalorder %s991_s9, %s1362_s5 }
  0x94   : > { %p993_p4 = scmp.ne.s32.totalorder %s991_s9, %s992_s26  ;;  %p998_p8 = scmp.lt.s32.totalorder %s996_s19, %s992_s26 }
  0x95   : > { %v449_v29 = vmul.f32 0.5, %v448_v28 }
  0x96   : > { %p994_p0 = pnand %p993_p4, %p1144_p11  ;;  %p999_p10 = por %p998_p8, %p997_p7 }
  0x97   : > { %v450_v30 = vsub.f32 1.5, %v449_v29 }
  0x98   : > { %p995_p5 = pneg %p994_p0 }
  0x99   : > { %v451_v31 = vmul.f32 %v799_v26, %v450_v30 }
  0x9a   : > { %p1000_p1 = pnand %p999_p10, %p995_p5 }
  0x9b   : > { %v455_v33 = vsel %vm454_vm2, %v799_v26, %v451_v31 }
  0x9c   : > { %v457_v34 = vmul.f32 %v456_v32, %v455_v33 }
  0x9e   : > { %v459_v35 = vperm.slane %v457_v34, 0 }
  0xa0   : > { %v461_v37 = vmul.f32 %v459_v35, %v1278_v11 }
  0xa2   : > { %v466_v38 = vadd.f32 %v797_v36, %v461_v37 }
  0xa4   : > { %467 = vst [vmem:[%s412_s30] sm:$0xff] %v466_v38 }
  0xa5   : > { %1003 = shalt.err (!%p1000_p1)
}
  0xa6   : > { %734 = dma.vmem_to_hbm [thread:$0]  (%p1144_p11), %s500_s20, 128, %s502_s29, %s479_s28  }
  0xa7 PF: > { %s539_s21 = sand.u32 1, %s1042_s24   ;;  %p754_p13 = pnand %p716_p9, %p1148_p12 }
  0xa8   : > { %s540_s13 = scalar_lea.sflag [#allocation4], %s539_s21 }
  0xa9   : > { %p755_p6 = pneg %p754_p13 }
  0xab   : > { %1033 = dma.done.wait (%p755_p6), %s540_s13, 128  }
  0xac   : > { %1035 = vsyncadd (%p755_p6), %s540_s13, 4294967168  ;;  %s1382_s8 = sadd.s32 4294967294, %s1054_s27  }
  0xad   : > { %s549_s1 = sand.u32 1, %s1382_s8  }
  0xae   : > { %s550_s11 = scalar_lea.sflag [#allocation12], %s549_s1 }
  0xaf   : > { %1037 = dma.done.wait (%p755_p6), %s550_s11, 32  }
  0xb0   : > { %1039 = vsyncadd (%p755_p6), %s550_s11, 4294967264  ;;  %s1383_s27 = sld [smem:[#allocation20_spill]]  ;;  %s1386_s24 = smov %s1046_s25 }
  0xb1   : > { %s1384_s12 = sld [smem:[#allocation19_spill]] }
  0xb2   : > { %s1385_s26 = sld [smem:[#allocation21_spill]] }
  0xb6   : > { %p30_p11 = scmp.ge.s32.totalorder %s1383_s27, 4  }
  0xb7   : > { %s1387_s25 = smov %s1384_s12 }
  0xb8   :  { %32 = sbr.rel (!%p30_p11) target bundleno = 13 (0xd), region = 157 }
  0xbd   :  { %564 = vsyncpa [#allocation3], 1 }
  0xbe   :  { %566 = vsyncpa [#allocation3 + $0x1], 1 }
  0xbf   :  { %567 = vsyncpa [#allocation6], 1 }
  0xc0   :  { %569 = vsyncpa [#allocation6 + $0x1], 1 }
  0xc1   :  { %570 = vsyncpa [#allocation9], 1 }
  0xc2   :  { %572 = vsyncpa [#allocation9 + $0x1], 1 }
  0xc3   :  { %573 = vsyncpa [#allocation4], 1 }
  0xc4   :  { %575 = vsyncpa [#allocation4 + $0x1], 1 }
  0xc5   :  { %576 = vsyncpa [#allocation12], 1 }
  0xc6   :  { %578 = vsyncpa [#allocation12 + $0x1], 1 }

</bundles_post_ra>
